<compile_context>
chip_gen: v6e
topology: v6e:2x2x1
jax: 0.10.0
libtpu: 0.0.40
codegen_flags: <defaults>
</compile_context>

<pallas_src>
import functools

import numpy as np

import jax
import jax.numpy as jnp
from jax import lax
from jax.experimental import pallas as pl
from jax.experimental.pallas import tpu as pltpu


# ------------------------------- helpers ------------------------------------

def _round_up(a: int, b: int) -> int:
    return -(-a // b) * b


def _concrete_scalar(p):
    """Return p as a Python float if it is concrete at trace time, else None."""
    if isinstance(p, (int, float)):
        return float(p)
    try:
        return float(np.asarray(jax.device_get(p)).reshape(-1)[0])
    except Exception:
        return None


def _default_tile_budget() -> int:
    """8 MiB row tiles on 128 MiB-VMEM parts (v5e/v6e), 4 MiB on 64 MiB (v7x)."""
    try:
        vmem = pltpu.get_tpu_info().vmem_capacity_bytes
    except Exception:
        vmem = 64 << 20
    return (8 << 20) if vmem >= (128 << 20) else (4 << 20)


# ------------------------------- kernels ------------------------------------

def _gem_kernel_static(x_ref, o_ref, *, p, eps, inv_hw):
    # x_ref: (tm, HW) native dtype in VMEM; o_ref: (tm, 1).  p is baked in.
    x = jnp.maximum(x_ref[...].astype(jnp.float32), eps)        # clamp  (VPU)
    p_int = int(round(p))
    if float(p_int) == float(p) and 1 <= p_int <= 16:
        xp = lax.integer_pow(x, p_int)                          # x**p   (VPU)
    else:
        xp = jnp.exp(p * jnp.log(x))                            # x**p   (EUP)
    mean = jnp.sum(xp, axis=-1, keepdims=True) * inv_hw         # mean   (XLU)
    # per-row root: 2 transcendentals per row only (negligible).
    o_ref[...] = jnp.exp(jnp.log(mean) * (1.0 / p)).astype(o_ref.dtype)


def _gem_kernel_dynamic(p_ref, x_ref, o_ref, *, eps, inv_hw):
    # p_ref: (1,) f32 in SMEM (scalar-prefetch); general (possibly traced) p.
    p = p_ref[0]
    x = jnp.maximum(x_ref[...].astype(jnp.float32), eps)
    xp = jnp.exp(p * jnp.log(x))                                # x > 0
    mean = jnp.sum(xp, axis=-1, keepdims=True) * inv_hw
    o_ref[...] = jnp.exp(jnp.log(mean) / p).astype(o_ref.dtype)


# ------------------------------- wrapper ------------------------------------

def gem_pallas(x, p, eps=1e-6, *, max_tile_bytes=None):
    """GeM pooling. x: (B, C, H, W), p: scalar/(1,) -> (B, C, 1, 1)."""
    b, c, h, w = x.shape
    hw = h * w
    m = b * c
    x2 = x.reshape(m, hw)                      # contiguous view, native dtype

    if max_tile_bytes is None:
        max_tile_bytes = _default_tile_budget()

    itemsize = jnp.dtype(x.dtype).itemsize
    sub = max(8, 32 // itemsize)               # sublane packing multiple
    row_bytes = hw * itemsize
    # TODO(synk): for degenerate HW where even `sub` rows exceed the tile
    # budget, add a second "arbitrary" grid axis over HW with a partial-sum
    # scratch accumulator (not needed for realistic GeM spatial sizes).
    budget_rows = max(sub, (max_tile_bytes // row_bytes) // sub * sub)
    min_rows = max(sub, ((1 << 20) // row_bytes) // sub * sub)   # ~1 MiB tiles
    target_rows = _round_up(pl.cdiv(m, 4), sub)                  # >= 4 steps
    tm = max(sub, min(budget_rows, max(target_rows, min_rows)))
    tm = min(tm, _round_up(m, sub))
    num_tiles = pl.cdiv(m, tm)                 # ragged last block, no padding

    tile_bytes = tm * hw * itemsize
    vmem_limit = int(min(48 << 20, max(16 << 20, 2 * tile_bytes + (2 << 20))))
    cparams = pltpu.CompilerParams(
        dimension_semantics=("parallel",),
        vmem_limit_bytes=vmem_limit,
    )

    out_shape = jax.ShapeDtypeStruct((m, 1), x.dtype)
    inv_hw = 1.0 / float(hw)

    p_static = _concrete_scalar(p)
    if p_static is not None:
        # Static p: bake it in; integer p uses the VPU multiply chain.
        p_int = int(round(p_static))
        p_is_int = float(p_int) == float(p_static) and 1 <= p_int <= 16
        cost = pl.CostEstimate(
            flops=((p_int + 1) if p_is_int else 3) * m * hw,
            transcendentals=(2 * m) if p_is_int else (2 * m * hw + 2 * m),
            bytes_accessed=m * hw * itemsize + m * itemsize,
        )
        kernel = functools.partial(
            _gem_kernel_static, p=float(p_static), eps=float(eps), inv_hw=inv_hw)
        out = pl.pallas_call(
            kernel,
            out_shape=out_shape,
            grid=(num_tiles,),
            in_specs=[pl.BlockSpec((tm, hw), lambda i: (i, 0))],
            out_specs=pl.BlockSpec((tm, 1), lambda i: (i, 0)),
            compiler_params=cparams,
            cost_estimate=cost,
        )(x2)
    else:
        # Traced / non-static p: scalar-prefetch p into SMEM, EUP pow path.
        cost = pl.CostEstimate(
            flops=3 * m * hw,
            transcendentals=2 * m * hw + 2 * m,
            bytes_accessed=m * hw * itemsize + m * itemsize + 4,
        )
        kernel = functools.partial(
            _gem_kernel_dynamic, eps=float(eps), inv_hw=inv_hw)
        p_arr = jnp.asarray(p, jnp.float32).reshape((1,))
        out = pl.pallas_call(
            kernel,
            out_shape=out_shape,
            grid_spec=pltpu.PrefetchScalarGridSpec(
                num_scalar_prefetch=1,
                grid=(num_tiles,),
                in_specs=[pl.BlockSpec((tm, hw), lambda i, p_ref: (i, 0))],
                out_specs=pl.BlockSpec((tm, 1), lambda i, p_ref: (i, 0)),
            ),
            compiler_params=cparams,
            cost_estimate=cost,
        )(p_arr, x2)

    return out.reshape(b, c, 1, 1)


class GeMPallas:
    """Pallas port of GeM(p=3, eps=1e-6)."""

    def __init__(self, p: float = 3.0, eps: float = 1e-6):
        self.p = jnp.ones((1,), jnp.float32) * p    # nn.Parameter(torch.ones(1)*p)
        self.eps = eps

    def __call__(self, x):
        return gem_pallas(x, self.p, self.eps)


# ------------------------------ reference -----------------------------------

def _gem_ref(x, p, eps):
    pv = jnp.asarray(p, jnp.float32).reshape(())
    xc = jnp.maximum(x.astype(jnp.float32), eps)
    pooled = jnp.mean(xc ** pv, axis=(-2, -1), keepdims=True)
    return (pooled ** (1.0 / pv)).astype(x.dtype)


if __name__ == "__main__":
    key = jax.random.PRNGKey(0)

    # Primary check: default GeM(p=3) on a small (B, C, H, W) input.
    x = jax.random.normal(key, (2, 4, 16, 16), jnp.float32)
    model = GeMPallas(p=3.0, eps=1e-6)
    y = jax.block_until_ready(model(x))
    assert y.shape == (2, 4, 1, 1)
    err = float(jnp.max(jnp.abs(y - _gem_ref(x, model.p, model.eps))))
    assert err < 1e-4, f"static-p max abs err {err}"

    # Ragged-grid check (row count not a multiple of the tile, odd HW).
    x3 = jax.random.normal(jax.random.PRNGKey(1), (3, 5, 7, 7), jnp.float32)
    y3 = jax.block_until_ready(model(x3))
    assert y3.shape == (3, 5, 1, 1)
    err3 = float(jnp.max(jnp.abs(y3 - _gem_ref(x3, model.p, model.eps))))
    assert err3 < 1e-4, f"ragged max abs err {err3}"

    # Dynamic-p (traced, non-integer) fallback path.
    p_dyn = jnp.array([2.5], jnp.float32)
    y_dyn = jax.block_until_ready(
        jax.jit(lambda xx, pp: gem_pallas(xx, pp, 1e-6))(x, p_dyn))
    err_d = float(jnp.max(jnp.abs(y_dyn - _gem_ref(x, p_dyn, 1e-6))))
    assert err_d < 1e-4, f"dynamic-p max abs err {err_d}"

    print("KERNEL_OK")
</pallas_src>

<mosaic_0001>
module attributes {stable_mosaic.version = 11 : i64} {
  func.func @_gem_kernel_static(%arg0: i32, %arg1: memref<8x256xf32, #tpu.memory_space<vmem>>, %arg2: memref<8x1xf32, #tpu.memory_space<vmem>>) attributes {dimension_semantics = [#tpu.dimension_semantics<parallel>], iteration_bounds = array<i64: 1>, scalar_prefetch = 0 : i64, scratch_operands = 0 : i64, tpu.core_type = #tpu.core_type<tc>, window_params = [{transform_indices = @transform_0, window_bounds = array<i64: 8, 256>}, {transform_indices = @transform_1, window_bounds = array<i64: 8, 1>}]} {
    %c0 = arith.constant 0 : index
    %c0_0 = arith.constant 0 : index
    %0 = vector.load %arg1[%c0, %c0_0] : memref<8x256xf32, #tpu.memory_space<vmem>>, vector<8x256xf32>
    %cst = arith.constant 9.99999997E-7 : f32
    %1 = vector.broadcast %cst : f32 to vector<8x256xf32>
    %2 = arith.maximumf %0, %1 : vector<8x256xf32>
    %3 = arith.mulf %2, %2 : vector<8x256xf32>
    %4 = arith.mulf %2, %3 : vector<8x256xf32>
    %cst_1 = arith.constant dense<0.000000e+00> : vector<8xf32>
    %5 = vector.multi_reduction <add>, %4, %cst_1 [1] : vector<8x256xf32> to vector<8xf32>
    %6 = vector.shape_cast %5 : vector<8xf32> to vector<8x1xf32>
    %cst_2 = arith.constant 3.906250e-03 : f32
    %7 = vector.broadcast %cst_2 : f32 to vector<8x1xf32>
    %8 = arith.mulf %6, %7 : vector<8x1xf32>
    %9 = math.log %8 : vector<8x1xf32>
    %cst_3 = arith.constant 0.333333343 : f32
    %10 = vector.broadcast %cst_3 : f32 to vector<8x1xf32>
    %11 = arith.mulf %9, %10 : vector<8x1xf32>
    %12 = math.exp %11 : vector<8x1xf32>
    %c0_4 = arith.constant 0 : index
    %c0_5 = arith.constant 0 : index
    %13 = vector.load %arg2[%c0_4, %c0_5] : memref<8x1xf32, #tpu.memory_space<vmem>>, vector<8x1xf32>
    tpu.vector_store %arg2[%c0_4, %c0_5], %12 {strides = array<i32>} : memref<8x1xf32, #tpu.memory_space<vmem>>, vector<8x1xf32>,
    return
  }
  func.func @transform_0(%arg0: i32) -> (i32, i32) {
    %c0_i32 = arith.constant 0 : i32
    %c0_i32_0 = arith.constant 0 : i32
    return %arg0, %c0_i32 : i32, i32
  }
  func.func @transform_1(%arg0: i32) -> (i32, i32) {
    %c0_i32 = arith.constant 0 : i32
    %c0_i32_0 = arith.constant 0 : i32
    return %arg0, %c0_i32 : i32, i32
  }
}

</mosaic_0001>

<bundles_post_ra>
// kernel: tpu_custom_call.1
= control target key start
LH: loop header
LB: loop body
LE: loop exit
PB: predicated region body
PF: predicated region fallthrough
CT: control target
= control target key end

     0   :  { %6 = vsyncpa [#allocation3], 0  ;;  %s71_s6 = smov [#allocation2]   ;;  %s88_s0 = inlined_call_operand.hbm [shape: f32[8,256], index: 0, kind: input, shape index: {}]   ;;  %s89_s1 = inlined_call_operand.vmem [shape: f32[8,1], index: 1, kind: output, shape index: {}]  }
   0x1   :  { %s13_s7 = sshll.u32 %s71_s6, 4  ;;  %s14_s7 = int_to_ptr.vmem [resolvable:$true] %s13_s7 }
   0x2   :  { %s57_s8 = scalar_lea.vmem %s14_s7, 256  ;;  %p62_p1 = scmp.lt.s32.totalorder %s14_s7, %s14_s7 }
   0x3   :  { %p58_p0 = scmp.ne.s32.totalorder %s14_s7, %s57_s8  ;;  %p63_p2 = scmp.lt.s32.totalorder %s57_s8, %s57_s8 }
   0x5   :  { %p64_p3 = por %p63_p2, %p62_p1 }
   0x7   :  { %p65_p4 = pnand %p64_p3, %p58_p0 }
   0x9   :  { %68 = shalt.err (!%p65_p4)
}
   0xa   :  { %16 = dma.hbm_to_vmem [thread:$0]  %s88_s0, 256, %s14_s7, [#allocation3]  }
   0xb   :  { %69 = dma.done.wait [#allocation3], 256  }
   0xc   :  { %70 = vsyncadd [#allocation3], 4294967040  ;;  %v20_v0 = vld [vmem:[#allocation2] sm:$0xff]  ;;  %v21_v1 = vld [vmem:[#allocation2 + $0x8] sm:$0xff]  ;;  %vm37_vm0 = vcmask 7168  }
   0xd   :  { %v22_v2 = vmax.f32 %v20_v0, 1e-06  ;;  %v23_v3 = vmax.f32 %v21_v1, 1e-06 }
   0xf   :  { %v24_v4 = vmul.f32 %v22_v2, %v22_v2  ;;  %v25_v5 = vmul.f32 %v23_v3, %v23_v3 }
  0x11   :  { %v26_v6 = vmul.f32 %v24_v4, %v22_v2  ;;  %v27_v7 = vmul.f32 %v25_v5, %v23_v3 }
  0x13   :  { %v28_v8 = vadd.f32 %v27_v7, %v26_v6 }
  0x15   :  { %29 = vadd.xlane.f32.xlu0 %v28_v8 }
  0x9e   :  { %v30_v9 = vpop.xlane.xlu0 %29 }
  0x9f   :  { %v31_v10 = vmul.f32 0.00390625, %v30_v9 }
  0xa1   :  { %45 = vlog2.f32 %v31_v10 }
  0xae   :  { %v46_v11 = vpop.eup %45 }
  0xaf   :  { %v33_v12 = vmul.f32 0.6931472, %v46_v11 }
  0xb1   :  { %v34_v13 = vmul.f32 0.33333334, %v33_v12 }
  0xb3   :  { %v35_v14 = vmul.f32 1.442695, %v34_v13 }
  0xb5   :  { %47 = vpow2.f32 %v35_v14 }
  0xc2   :  { %v48_v15 = vpop.eup %47 }
  0xc3   :  { %38 = vst.msk [vmem:[%s89_s1] sm:$0xff] %vm37_vm0, %v48_v15 }
  0xc4   :  { %43 = vsyncpa [#allocation3], 1 }

</bundles_post_ra>
